<compile_context>
chip_gen: v7x
topology: tpu7x:2x2x1
jax: 0.10.0
libtpu: 0.0.40
codegen_flags: <defaults>
</compile_context>

<pallas_src>
import math

import jax
import jax.numpy as jnp
from jax.experimental import pallas as pl
from jax.experimental.pallas import tpu as pltpu


# ---------------------------------------------------------------------------
# Kernel: one batch tile of the fused MLP + reparameterized sample.
# Weights / biases / std are resident in VMEM; obs / eps / action stream.
# ---------------------------------------------------------------------------
def mlp_policy_kernel(obs_ref,
                      w0_ref, b0_ref,
                      w1_ref, b1_ref,
                      wo_ref, bo_ref,
                      std_ref, eps_ref,
                      act_ref):
    x = obs_ref[...]                                                   # (TB, ob_dim) f32
    # hidden layer 0: Linear + Tanh
    h = jnp.tanh(
        jnp.dot(x, w0_ref[...], preferred_element_type=jnp.float32) + b0_ref[...])
    # hidden layer 1: Linear + Tanh
    h = jnp.tanh(
        jnp.dot(h, w1_ref[...], preferred_element_type=jnp.float32) + b1_ref[...])
    # output layer: Linear -> mean
    mean = jnp.dot(h, wo_ref[...], preferred_element_type=jnp.float32) + bo_ref[...]
    # reparameterized sample: mean + std * eps  (std = exp(logstd), precomputed)
    act_ref[...] = mean + std_ref[...] * eps_ref[...]


# ---------------------------------------------------------------------------
# Wrapper.
# ---------------------------------------------------------------------------
_SUBLANE = 8


def _round_up(x, m):
    return ((x + m - 1) // m) * m


def prepare_params(params):
    """One-time per-update param prep: f32 cast, (1, dim) biases, std = exp(logstd)."""
    (w0, b0, w1, b1, wo, bo, logstd) = params
    f32 = lambda a: jnp.asarray(a, jnp.float32)
    row = lambda a: jnp.reshape(f32(a), (1, -1))
    return (f32(w0), row(b0),
            f32(w1), row(b1),
            f32(wo), row(bo),
            jnp.exp(row(logstd)))


def mlp_policy_forward(obs, prepared, eps, *, batch_tile=1024):
    """action = MLP(obs) + exp(logstd) * eps, fused in one Pallas kernel."""
    (w0, b0, w1, b1, wo, bo, std) = prepared
    obs = jnp.asarray(obs, jnp.float32)
    eps = jnp.asarray(eps, jnp.float32)
    B, ob_dim = obs.shape
    ac_dim = wo.shape[1]

    # Batch tile: sublane-aligned, large (amortize ~0.35us/step overhead),
    # but keep >= 2 grid steps when the batch allows it (v7x megacore).
    TB = min(batch_tile, _round_up(B, _SUBLANE))
    if _round_up(B, TB) == TB and B > 2 * _SUBLANE:
        TB = _round_up((B + 1) // 2, _SUBLANE)
    BP = _round_up(B, TB)

    # Only pad batch rows (feature dims stay at their real sizes).
    obs_in = obs if BP == B else jnp.pad(obs, ((0, BP - B), (0, 0)))
    eps_in = eps if BP == B else jnp.pad(eps, ((0, BP - B), (0, 0)))

    grid = (BP // TB,)

    def stream(cols):
        # Streamed batch tile: last dim == full feature dim (exempt from 128 rule).
        return pl.BlockSpec((TB, cols), lambda i: (i, 0))

    def resident(a):
        # Full-array block, constant index map -> stays in VMEM across the grid.
        return pl.BlockSpec(a.shape, lambda i: (0, 0))

    out = pl.pallas_call(
        mlp_policy_kernel,
        out_shape=jax.ShapeDtypeStruct((BP, ac_dim), jnp.float32),
        grid=grid,
        in_specs=[
            stream(ob_dim),                        # obs        (streams per tile)
            resident(w0), resident(b0),            # layer 0    (resident)
            resident(w1), resident(b1),            # layer 1    (resident)
            resident(wo), resident(bo),            # output     (resident)
            resident(std),                         # exp(logstd)(resident)
            stream(ac_dim),                        # eps        (streams per tile)
        ],
        out_specs=stream(ac_dim),
        compiler_params=pltpu.CompilerParams(
            dimension_semantics=("parallel",),     # megacore-shardable on v7x
        ),
    )(obs_in, w0, b0, w1, b1, wo, bo, std, eps_in)

    return out if BP == B else out[:B]


# ---------------------------------------------------------------------------
# Parameter init mimicking torch.nn.Linear defaults.
# ---------------------------------------------------------------------------
def init_params(key, ob_dim, ac_dim, n_layers, size):
    assert n_layers == 2, "this script hardcodes n_layers=2 in the kernel"
    keys = jax.random.split(key, 6)

    def linear(kw, kb, fan_in, fan_out):
        bound = 1.0 / math.sqrt(fan_in)
        w = jax.random.uniform(kw, (fan_in, fan_out), jnp.float32, -bound, bound)
        b = jax.random.uniform(kb, (fan_out,), jnp.float32, -bound, bound)
        return w, b

    w0, b0 = linear(keys[0], keys[1], ob_dim, size)
    w1, b1 = linear(keys[2], keys[3], size, size)
    wo, bo = linear(keys[4], keys[5], size, ac_dim)
    logstd = jnp.zeros((ac_dim,), jnp.float32)       # nn.Parameter(torch.zeros(ac_dim))
    return (w0, b0, w1, b1, wo, bo, logstd)


def _reference(obs, params, eps):
    (w0, b0, w1, b1, wo, bo, logstd) = params
    h = jnp.tanh(obs @ w0 + b0)
    h = jnp.tanh(h @ w1 + b1)
    mean = h @ wo + bo
    return mean + jnp.exp(logstd) * eps


if __name__ == "__main__":
    # Small shapes consistent with MLPPolicySL(ac_dim=4, ob_dim=8, n_layers=2, size=32)
    B, ob_dim, ac_dim, n_layers, size = 2, 8, 4, 2, 32

    root = jax.random.PRNGKey(0)
    k_params, k_obs, k_eps, k_obs2, k_eps2 = jax.random.split(root, 5)

    params = init_params(k_params, ob_dim, ac_dim, n_layers, size)
    prepared = prepare_params(params)   # hoisted: done once per param update

    # --- small case (single batch tile) ---
    obs = jax.random.normal(k_obs, (B, ob_dim), jnp.float32)
    eps = jax.random.normal(k_eps, (B, ac_dim), jnp.float32)   # N(0,1) noise for rsample
    action = jax.block_until_ready(mlp_policy_forward(obs, prepared, eps))
    ref = _reference(obs, params, eps)
    assert action.shape == (B, ac_dim)
    assert jnp.allclose(action, ref, atol=1e-5, rtol=1e-5), "mismatch vs reference (small batch)"

    # --- larger case: exercises the multi-step batch-tiled pipeline (grid >= 2) ---
    B2 = 512
    obs2 = jax.random.normal(k_obs2, (B2, ob_dim), jnp.float32)
    eps2 = jax.random.normal(k_eps2, (B2, ac_dim), jnp.float32)
    action2 = jax.block_until_ready(mlp_policy_forward(obs2, prepared, eps2, batch_tile=1024))
    ref2 = _reference(obs2, params, eps2)
    assert action2.shape == (B2, ac_dim)
    assert jnp.allclose(action2, ref2, atol=1e-5, rtol=1e-5), "mismatch vs reference (tiled batch)"

    print("KERNEL_OK")
</pallas_src>

<mosaic_0001>
module attributes {stable_mosaic.version = 11 : i64} {
  func.func @mlp_policy_kernel(%arg0: i32, %arg1: memref<8x8xf32, #tpu.memory_space<vmem>>, %arg2: memref<8x32xf32, #tpu.memory_space<vmem>>, %arg3: memref<1x32xf32, #tpu.memory_space<vmem>>, %arg4: memref<32x32xf32, #tpu.memory_space<vmem>>, %arg5: memref<1x32xf32, #tpu.memory_space<vmem>>, %arg6: memref<32x4xf32, #tpu.memory_space<vmem>>, %arg7: memref<1x4xf32, #tpu.memory_space<vmem>>, %arg8: memref<1x4xf32, #tpu.memory_space<vmem>>, %arg9: memref<8x4xf32, #tpu.memory_space<vmem>>, %arg10: memref<8x4xf32, #tpu.memory_space<vmem>>) attributes {dimension_semantics = [#tpu.dimension_semantics<parallel>], iteration_bounds = array<i64: 1>, scalar_prefetch = 0 : i64, scratch_operands = 0 : i64, tpu.core_type = #tpu.core_type<tc>, window_params = [{transform_indices = @transform_0, window_bounds = array<i64: 8, 8>}, {pipeline_mode = #tpu.pipeline_mode<synchronous>, transform_indices = @transform_1, window_bounds = array<i64: 8, 32>}, {pipeline_mode = #tpu.pipeline_mode<synchronous>, transform_indices = @transform_2, window_bounds = array<i64: 1, 32>}, {pipeline_mode = #tpu.pipeline_mode<synchronous>, transform_indices = @transform_3, window_bounds = array<i64: 32, 32>}, {pipeline_mode = #tpu.pipeline_mode<synchronous>, transform_indices = @transform_4, window_bounds = array<i64: 1, 32>}, {pipeline_mode = #tpu.pipeline_mode<synchronous>, transform_indices = @transform_5, window_bounds = array<i64: 32, 4>}, {pipeline_mode = #tpu.pipeline_mode<synchronous>, transform_indices = @transform_6, window_bounds = array<i64: 1, 4>}, {pipeline_mode = #tpu.pipeline_mode<synchronous>, transform_indices = @transform_7, window_bounds = array<i64: 1, 4>}, {transform_indices = @transform_8, window_bounds = array<i64: 8, 4>}, {transform_indices = @transform_9, window_bounds = array<i64: 8, 4>}]} {
    %c0 = arith.constant 0 : index
    %c0_0 = arith.constant 0 : index
    %0 = vector.load %arg1[%c0, %c0_0] : memref<8x8xf32, #tpu.memory_space<vmem>>, vector<8x8xf32>
    %c0_1 = arith.constant 0 : index
    %c0_2 = arith.constant 0 : index
    %1 = vector.load %arg2[%c0_1, %c0_2] : memref<8x32xf32, #tpu.memory_space<vmem>>, vector<8x32xf32>
    %cst = arith.constant dense<0.000000e+00> : vector<8x32xf32>
    %2 = tpu.matmul %0, %1, %cst {dimension_numbers = #tpu.dot_dimension_numbers<[1], [0], [0], [1], [0, 0, 1, 1], [], []>} : vector<8x8xf32>, vector<8x32xf32>, vector<8x32xf32> -> vector<8x32xf32>
    %c0_3 = arith.constant 0 : index
    %c0_4 = arith.constant 0 : index
    %3 = vector.load %arg3[%c0_3, %c0_4] : memref<1x32xf32, #tpu.memory_space<vmem>>, vector<1x32xf32>
    %4 = vector.broadcast %3 : vector<1x32xf32> to vector<8x32xf32>
    %5 = arith.addf %2, %4 : vector<8x32xf32>
    %6 = math.tanh %5 : vector<8x32xf32>
    %c0_5 = arith.constant 0 : index
    %c0_6 = arith.constant 0 : index
    %7 = vector.load %arg4[%c0_5, %c0_6] : memref<32x32xf32, #tpu.memory_space<vmem>>, vector<32x32xf32>
    %cst_7 = arith.constant dense<0.000000e+00> : vector<8x32xf32>
    %8 = tpu.matmul %6, %7, %cst_7 {dimension_numbers = #tpu.dot_dimension_numbers<[1], [0], [0], [1], [0, 0, 1, 1], [], []>} : vector<8x32xf32>, vector<32x32xf32>, vector<8x32xf32> -> vector<8x32xf32>
    %c0_8 = arith.constant 0 : index
    %c0_9 = arith.constant 0 : index
    %9 = vector.load %arg5[%c0_8, %c0_9] : memref<1x32xf32, #tpu.memory_space<vmem>>, vector<1x32xf32>
    %10 = vector.broadcast %9 : vector<1x32xf32> to vector<8x32xf32>
    %11 = arith.addf %8, %10 : vector<8x32xf32>
    %12 = math.tanh %11 : vector<8x32xf32>
    %c0_10 = arith.constant 0 : index
    %c0_11 = arith.constant 0 : index
    %13 = vector.load %arg6[%c0_10, %c0_11] : memref<32x4xf32, #tpu.memory_space<vmem>>, vector<32x4xf32>
    %cst_12 = arith.constant dense<0.000000e+00> : vector<8x4xf32>
    %14 = tpu.matmul %12, %13, %cst_12 {dimension_numbers = #tpu.dot_dimension_numbers<[1], [0], [0], [1], [0, 0, 1, 1], [], []>} : vector<8x32xf32>, vector<32x4xf32>, vector<8x4xf32> -> vector<8x4xf32>
    %c0_13 = arith.constant 0 : index
    %c0_14 = arith.constant 0 : index
    %15 = vector.load %arg7[%c0_13, %c0_14] : memref<1x4xf32, #tpu.memory_space<vmem>>, vector<1x4xf32>
    %16 = vector.broadcast %15 : vector<1x4xf32> to vector<8x4xf32>
    %17 = arith.addf %14, %16 : vector<8x4xf32>
    %c0_15 = arith.constant 0 : index
    %c0_16 = arith.constant 0 : index
    %18 = vector.load %arg8[%c0_15, %c0_16] : memref<1x4xf32, #tpu.memory_space<vmem>>, vector<1x4xf32>
    %c0_17 = arith.constant 0 : index
    %c0_18 = arith.constant 0 : index
    %19 = vector.load %arg9[%c0_17, %c0_18] : memref<8x4xf32, #tpu.memory_space<vmem>>, vector<8x4xf32>
    %20 = vector.broadcast %18 : vector<1x4xf32> to vector<8x4xf32>
    %21 = arith.mulf %20, %19 : vector<8x4xf32>
    %22 = arith.addf %17, %21 : vector<8x4xf32>
    %c0_19 = arith.constant 0 : index
    %c0_20 = arith.constant 0 : index
    %23 = vector.load %arg10[%c0_19, %c0_20] : memref<8x4xf32, #tpu.memory_space<vmem>>, vector<8x4xf32>
    tpu.vector_store %arg10[%c0_19, %c0_20], %22 {strides = array<i32>} : memref<8x4xf32, #tpu.memory_space<vmem>>, vector<8x4xf32>,
    return
  }
  func.func @transform_0(%arg0: i32) -> (i32, i32) {
    %c0_i32 = arith.constant 0 : i32
    %c0_i32_0 = arith.constant 0 : i32
    return %arg0, %c0_i32 : i32, i32
  }
  func.func @transform_1(%arg0: i32) -> (i32, i32) {
    %c0_i32 = arith.constant 0 : i32
    %c0_i32_0 = arith.constant 0 : i32
    %c0_i32_1 = arith.constant 0 : i32
    return %c0_i32, %c0_i32_0 : i32, i32
  }
  func.func @transform_2(%arg0: i32) -> (i32, i32) {
    %c0_i32 = arith.constant 0 : i32
    %c0_i32_0 = arith.constant 0 : i32
    %c0_i32_1 = arith.constant 0 : i32
    return %c0_i32, %c0_i32_0 : i32, i32
  }
  func.func @transform_3(%arg0: i32) -> (i32, i32) {
    %c0_i32 = arith.constant 0 : i32
    %c0_i32_0 = arith.constant 0 : i32
    %c0_i32_1 = arith.constant 0 : i32
    return %c0_i32, %c0_i32_0 : i32, i32
  }
  func.func @transform_4(%arg0: i32) -> (i32, i32) {
    %c0_i32 = arith.constant 0 : i32
    %c0_i32_0 = arith.constant 0 : i32
    %c0_i32_1 = arith.constant 0 : i32
    return %c0_i32, %c0_i32_0 : i32, i32
  }
  func.func @transform_5(%arg0: i32) -> (i32, i32) {
    %c0_i32 = arith.constant 0 : i32
    %c0_i32_0 = arith.constant 0 : i32
    %c0_i32_1 = arith.constant 0 : i32
    return %c0_i32, %c0_i32_0 : i32, i32
  }
  func.func @transform_6(%arg0: i32) -> (i32, i32) {
    %c0_i32 = arith.constant 0 : i32
    %c0_i32_0 = arith.constant 0 : i32
    %c0_i32_1 = arith.constant 0 : i32
    return %c0_i32, %c0_i32_0 : i32, i32
  }
  func.func @transform_7(%arg0: i32) -> (i32, i32) {
    %c0_i32 = arith.constant 0 : i32
    %c0_i32_0 = arith.constant 0 : i32
    %c0_i32_1 = arith.constant 0 : i32
    return %c0_i32, %c0_i32_0 : i32, i32
  }
  func.func @transform_8(%arg0: i32) -> (i32, i32) {
    %c0_i32 = arith.constant 0 : i32
    %c0_i32_0 = arith.constant 0 : i32
    return %arg0, %c0_i32 : i32, i32
  }
  func.func @transform_9(%arg0: i32) -> (i32, i32) {
    %c0_i32 = arith.constant 0 : i32
    %c0_i32_0 = arith.constant 0 : i32
    return %arg0, %c0_i32 : i32, i32
  }
}

</mosaic_0001>

<bundles_post_ra>
// kernel: tpu_custom_call.1
= control target key start
LH: loop header
LB: loop body
LE: loop exit
PB: predicated region body
PF: predicated region fallthrough
CT: control target
= control target key end

     0   :  { %vm41_vm0 = vcmask 64512   ;;  %v367_v0 = vmov 0.0   ;;  %vm368_vm1 = vmmov 0   ;;  %v369_v3 = vmov 0.0|0.0   ;;  %s470_s1 = inlined_call_operand.vmem [shape: f32[8,32], index: 1, kind: input, shape index: {}]   ;;  %s471_s0 = inlined_call_operand.vmem [shape: f32[8,8], index: 0, kind: input, shape index: {}]   ;;  %s472_s3 = inlined_call_operand.vmem [shape: f32[32,32], index: 3, kind: input, shape index: {}]   ;;  %s473_s2 = inlined_call_operand.vmem [shape: f32[1,32], index: 2, kind: input, shape index: {}]   ;;  %s474_s5 = inlined_call_operand.vmem [shape: f32[32,4], index: 5, kind: input, shape index: {}]   ;;  %s475_s4 = inlined_call_operand.vmem [shape: f32[1,32], index: 4, kind: input, shape index: {}]   ;;  %s476_s7 = inlined_call_operand.vmem [shape: f32[1,4], index: 7, kind: input, shape index: {}]   ;;  %s477_s8 = inlined_call_operand.vmem [shape: f32[8,4], index: 8, kind: input, shape index: {}]   ;;  %s478_s6 = inlined_call_operand.vmem [shape: f32[1,4], index: 6, kind: input, shape index: {}]   ;;  %s479_s9 = inlined_call_operand.vmem [shape: f32[8,4], index: 9, kind: output, shape index: {}]  }
   0x1   :  { %321 = vmatprep.subr.mxu0 %v367_v0  ;;  %v33_v1 = vld [vmem:[%s470_s1] sm:$0xff]  ;;  %323 = vmatprep.mubr.msk.f32.mxu0 %vm368_vm1, %v367_v0  ;;  %v117_v5 = vld [vmem:[%s472_s3 + $0x8] sm:$0xff]  ;;  %v118_v6 = vld [vmem:[%s472_s3 + $0x10] sm:$0xff]  ;;  %vm127_vm2 = vcmask 261120   ;;  %vm296_vm3 = vcmask 31744  }
   0x2   :  { %v32_v2 = vld [vmem:[%s471_s0] sm:$0xff]  ;;  %322 = vmatpush3.msra.mxu0 %v33_v1  ;;  %334 = vmatprep.mubr.msk.f32.mxu1 %vm368_vm1, %v367_v0  ;;  %v119_v8 = vld [vmem:[%s472_s3 + $0x18] sm:$0xff]  ;;  %v203_v16 = vld [vmem:[%s474_s5 + $0x8] sm:$0xff] }
   0x3   :  { %324 = vmatmul.mubr.msk.f32.vlgmr.msra.gmra.mrb[0].mxu0 %vm41_vm0, %v32_v2  ;;  %348 = vmatprep.subr.bf16.mxu1 %v369_v3  ;;  %v116_v4 = vld [vmem:[%s472_s3] sm:$0xff]  ;;  %v352_v9 = vpack.c.bf16 %v119_v8, %v118_v6  ;;  %v204_v17 = vld [vmem:[%s474_s5 + $0x10] sm:$0xff]  ;;  %v205_v19 = vld [vmem:[%s474_s5 + $0x18] sm:$0xff] }
   0x4   :  { %345 = vmatprep.mubr.msk.f32.mxu0 %vm368_vm1, %v367_v0  ;;  %354 = vmatprep.subr.bf16.mxu0 %v369_v3  ;;  %v349_v7 = vpack.c.bf16 %v117_v5, %v116_v4  ;;  %v302_v10 = vld [vmem:[%s473_s2] ss:$0 sm:$0xff]  ;;  %v358_v20 = vpack.c.bf16 %v205_v19, %v204_v17 }
   0x5   :  { %v202_v15 = vld [vmem:[%s474_s5] sm:$0xff] }
   0x6   :  { %350 = vmatpush3.bf16.msra.mxu1 %v349_v7  ;;  %v355_v18 = vpack.c.bf16 %v203_v16, %v202_v15  ;;  %v304_v21 = vld [vmem:[%s475_s4] ss:$0 sm:$0xff] }
   0x7   :  { %351 = vmatprep.subr.bf16.mxu1 %v369_v3  ;;  %v308_v26 = vld [vmem:[%s476_s7] ss:$0 sm:$0xff] }
   0x8   :  { %356 = vmatpush3.bf16.msra.mxu0 %v355_v18  ;;  %v287_v27 = vld [vmem:[%s477_s8] sm:$0xff] }
   0x9   :  { %357 = vmatprep.subr.bf16.mxu0 %v369_v3  ;;  %v306_v28 = vld [vmem:[%s478_s6] ss:$0 sm:$0xff]  ;;  %v294_v29 = vmul.f32 %v308_v26, %v287_v27 }
   0xa   :  { %353 = vmatpush3.bf16.msra.mxu1 %v352_v9 }
   0xc   :  { %359 = vmatpush3.bf16.msra.mxu0 %v358_v20 }
  0xd6   :  { %v111_v11 = vpop.f32.mrb[0].mxu0 }
  0xd7   :  { %v112_v12 = vadd.f32 %v302_v10, %v111_v11  ;;  %v325_v13 = vpop.f32.mrb[1].mxu0 }
  0xd9   :  { %363 = vtanh.f32 %v112_v12 }
  0xe3   :  { %v364_v14 = vpop.eup %363 }
  0xe4   :  { %335 = vmatmul.mubr.msk.f32.vlgmr.msra.gmra.mrb[0].mxu1 %vm127_vm2, %v364_v14 }
 0x1b7   :  { %v197_v22 = vpop.f32.mrb[0].mxu1 }
 0x1b8   :  { %v198_v23 = vadd.f32 %v304_v21, %v197_v22  ;;  %v336_v24 = vpop.f32.mrb[1].mxu1 }
 0x1ba   :  { %365 = vtanh.f32 %v198_v23 }
 0x1c4   :  { %v366_v25 = vpop.eup %365 }
 0x1c5   :  { %346 = vmatmul.mubr.msk.f32.vlgmr.msra.gmra.mrb[2].mxu0 %vm127_vm2, %v366_v25 }
 0x298   :  { %v282_v30 = vpop.f32.mrb[2].mxu0 }
 0x299   :  { %v283_v31 = vadd.f32 %v306_v28, %v282_v30  ;;  %v347_v32 = vpop.f32.mrb[3].mxu0 }
 0x29b   :  { %v295_v33 = vadd.f32 %v294_v29, %v283_v31 }
 0x29d   :  { %297 = vst.msk [vmem:[%s479_s9] sm:$0xff] %vm296_vm3, %v295_v33 }

</bundles_post_ra>
